<compile_context>
chip_gen: v7x
topology: tpu7x:2x2x1
jax: 0.10.0
libtpu: 0.0.40
codegen_flags: <defaults>
</compile_context>

<pallas_src>
import math
import functools

import jax
import jax.numpy as jnp
from jax.experimental import pallas as pl
from jax.experimental.pallas import tpu as pltpu


def _mha_kernel(q_ref, k_ref, v_ref,
                wq_ref, bq_ref, wk_ref, bk_ref, wv_ref, bv_ref, wo_ref, bo_ref,
                o_ref, *, num_heads: int, d_k: int, seq_len: int, block_b: int):
    """One grid step: block_b batch elements -> projections + batched-head attention."""
    xq = q_ref[...]            # (block_b*seq_len, D)
    xk = k_ref[...]
    xv = v_ref[...]

    # Full-width projection GEMMs on the MXU: x @ W.T + b.
    # wq_ref / bq_ref are pre-scaled by 1/sqrt(d_k) on the host (folds the score scale).
    Q = jnp.dot(xq, wq_ref[...], preferred_element_type=jnp.float32) + bq_ref[...]
    K = jnp.dot(xk, wk_ref[...], preferred_element_type=jnp.float32) + bk_ref[...]
    V = jnp.dot(xv, wv_ref[...], preferred_element_type=jnp.float32) + bv_ref[...]

    # Gather per-(batch, head) tiles into one leading batch axis: (G, S, d_k),
    # G = block_b * num_heads.  Static slices + a major-axis stack; the two attention
    # matmuls then run as single batched contractions.
    def split_heads(x):
        tiles = []
        for b in range(block_b):
            rows = x[b * seq_len:(b + 1) * seq_len, :]          # (S, D), static slice
            for h in range(num_heads):
                tiles.append(rows[:, h * d_k:(h + 1) * d_k])    # (S, d_k), static slice
        return jnp.stack(tiles, axis=0)                         # (G, S, d_k)

    Qh = split_heads(Q)
    Kh = split_heads(K)
    Vh = split_heads(V)

    # Scaled dot-product attention, batched over (batch, head); scale already in Q.
    scores = jnp.einsum('gqd,gkd->gqk', Qh, Kh,
                        preferred_element_type=jnp.float32)      # (G, S, S)
    scores_max = jnp.max(scores, axis=-1, keepdims=True)
    e = jnp.exp(scores - scores_max)
    denom = jnp.sum(e, axis=-1, keepdims=True)
    probs = e * pl.reciprocal(denom, approx=True)
    attn = jnp.einsum('gqk,gkd->gqd', probs, Vh,
                      preferred_element_type=jnp.float32)        # (G, S, d_k)

    # combine_heads: back to (block_b*seq_len, D).
    rows_out = []
    for b in range(block_b):
        heads = [attn[b * num_heads + h] for h in range(num_heads)]
        rows_out.append(jnp.concatenate(heads, axis=-1))         # (S, D)
    combined = jnp.concatenate(rows_out, axis=0)                 # (block_b*S, D)

    # Output projection.
    out = jnp.dot(combined, wo_ref[...], preferred_element_type=jnp.float32) + bo_ref[...]
    o_ref[...] = out.astype(o_ref.dtype)


def multi_head_attention(q, k, v, params, *, num_heads: int):
    """q, k, v: (B, S, D) float32.  params: dict of transposed weights + biases."""
    B, S, D = q.shape
    assert D % num_heads == 0
    d_k = D // num_heads

    # Fatten the grid step: aim for ~256 projection rows per step, and keep the row
    # block a multiple of 8 sublanes (else fall back to a single full block).
    target_rows = 256
    bt = max(1, min(B, target_rows // max(S, 1)))
    while B % bt:
        bt -= 1
    if (bt * S) % 8 != 0:
        bt = B
    n_steps = B // bt

    # Present inputs/outputs as 2-D row-major slabs (free reshape in XLA).
    q2 = q.reshape(B * S, D)
    k2 = k.reshape(B * S, D)
    v2 = v.reshape(B * S, D)

    # Fold the 1/sqrt(d_k) attention scale into the Q projection (free, done once).
    inv_sqrt_dk = 1.0 / math.sqrt(d_k)
    wq_t = params["wq_t"] * inv_sqrt_dk
    bq = params["bq"] * inv_sqrt_dk

    row_block = pl.BlockSpec((bt * S, D), lambda i: (i, 0))
    full_mat = pl.BlockSpec((D, D), lambda i: (0, 0))
    full_bias = pl.BlockSpec((1, D), lambda i: (0, 0))

    kernel = functools.partial(_mha_kernel, num_heads=num_heads, d_k=d_k,
                               seq_len=S, block_b=bt)

    out2 = pl.pallas_call(
        kernel,
        out_shape=jax.ShapeDtypeStruct((B * S, D), jnp.float32),
        grid_spec=pltpu.PrefetchScalarGridSpec(
            num_scalar_prefetch=0,
            grid=(n_steps,),
            in_specs=[
                row_block, row_block, row_block,   # q, k, v (2-D slabs)
                full_mat, full_bias,               # W_q^T (pre-scaled), b_q (pre-scaled)
                full_mat, full_bias,               # W_k^T, b_k
                full_mat, full_bias,               # W_v^T, b_v
                full_mat, full_bias,               # W_o^T, b_o
            ],
            out_specs=row_block,
        ),
        compiler_params=pltpu.CompilerParams(
            dimension_semantics=("parallel",)),
    )(q2, k2, v2,
      wq_t, bq,
      params["wk_t"], params["bk"],
      params["wv_t"], params["bv"],
      params["wo_t"], params["bo"])

    return out2.reshape(B, S, D)


def _init_linear(key, d_model):
    """Deterministic PyTorch-style nn.Linear init: U(-1/sqrt(fan_in), 1/sqrt(fan_in))."""
    kw, kb = jax.random.split(key)
    bound = 1.0 / math.sqrt(d_model)
    w = jax.random.uniform(kw, (d_model, d_model), jnp.float32, -bound, bound)  # (out, in)
    b = jax.random.uniform(kb, (1, d_model), jnp.float32, -bound, bound)
    return w, b


def _reference_mha(q, k, v, params, num_heads):
    """Pure-JAX reference mirroring the PyTorch forward exactly (unscaled params)."""
    B, S, D = q.shape
    d_k = D // num_heads

    def lin(x, wt, b):
        return x @ wt + b

    def split(x):
        return x.reshape(B, S, num_heads, d_k).transpose(0, 2, 1, 3)  # (B, H, S, d_k)

    Q = split(lin(q, params["wq_t"], params["bq"]))
    K = split(lin(k, params["wk_t"], params["bk"]))
    V = split(lin(v, params["wv_t"], params["bv"]))

    scores = jnp.einsum("bhqd,bhkd->bhqk", Q, K) / math.sqrt(d_k)
    probs = jax.nn.softmax(scores, axis=-1)
    attn = jnp.einsum("bhqk,bhkd->bhqd", probs, V)          # (B, H, S, d_k)
    combined = attn.transpose(0, 2, 1, 3).reshape(B, S, D)  # combine_heads
    return lin(combined, params["wo_t"], params["bo"])


if __name__ == "__main__":
    # Small shapes consistent with the module: (batch, seq, d_model), d_model % num_heads == 0
    B, S, D = 2, 8, 32
    num_heads = 2

    key = jax.random.PRNGKey(0)
    kq, kk, kv, k1, k2, k3, k4 = jax.random.split(key, 7)

    q = jax.random.normal(kq, (B, S, D), jnp.float32)
    k = jax.random.normal(kk, (B, S, D), jnp.float32)
    v = jax.random.normal(kv, (B, S, D), jnp.float32)

    wq, bq = _init_linear(k1, D)
    wk, bk = _init_linear(k2, D)
    wv, bv = _init_linear(k3, D)
    wo, bo = _init_linear(k4, D)

    params = dict(
        wq_t=wq.T, bq=bq,
        wk_t=wk.T, bk=bk,
        wv_t=wv.T, bv=bv,
        wo_t=wo.T, bo=bo,
    )

    out = multi_head_attention(q, k, v, params, num_heads=num_heads)
    out = jax.block_until_ready(out)

    ref = _reference_mha(q, k, v, params, num_heads)
    assert out.shape == (B, S, D)
    # Tolerance accounts for the approximate (EUP) reciprocal in the softmax denominator.
    assert jnp.allclose(out, ref, atol=5e-3, rtol=5e-3), "Pallas output mismatch vs reference"

    print("KERNEL_OK")
</pallas_src>

<mosaic_0001>
module attributes {stable_mosaic.version = 11 : i64} {
  func.func @_mha_kernel(%arg0: i32, %arg1: memref<16x32xf32, #tpu.memory_space<vmem>>, %arg2: memref<16x32xf32, #tpu.memory_space<vmem>>, %arg3: memref<16x32xf32, #tpu.memory_space<vmem>>, %arg4: memref<32x32xf32, #tpu.memory_space<vmem>>, %arg5: memref<1x32xf32, #tpu.memory_space<vmem>>, %arg6: memref<32x32xf32, #tpu.memory_space<vmem>>, %arg7: memref<1x32xf32, #tpu.memory_space<vmem>>, %arg8: memref<32x32xf32, #tpu.memory_space<vmem>>, %arg9: memref<1x32xf32, #tpu.memory_space<vmem>>, %arg10: memref<32x32xf32, #tpu.memory_space<vmem>>, %arg11: memref<1x32xf32, #tpu.memory_space<vmem>>, %arg12: memref<16x32xf32, #tpu.memory_space<vmem>>) attributes {dimension_semantics = [#tpu.dimension_semantics<parallel>], iteration_bounds = array<i64: 1>, scalar_prefetch = 0 : i64, scratch_operands = 0 : i64, tpu.core_type = #tpu.core_type<tc>, window_params = [{transform_indices = @transform_0, window_bounds = array<i64: 16, 32>}, {transform_indices = @transform_1, window_bounds = array<i64: 16, 32>}, {transform_indices = @transform_2, window_bounds = array<i64: 16, 32>}, {pipeline_mode = #tpu.pipeline_mode<synchronous>, transform_indices = @transform_3, window_bounds = array<i64: 32, 32>}, {pipeline_mode = #tpu.pipeline_mode<synchronous>, transform_indices = @transform_4, window_bounds = array<i64: 1, 32>}, {pipeline_mode = #tpu.pipeline_mode<synchronous>, transform_indices = @transform_5, window_bounds = array<i64: 32, 32>}, {pipeline_mode = #tpu.pipeline_mode<synchronous>, transform_indices = @transform_6, window_bounds = array<i64: 1, 32>}, {pipeline_mode = #tpu.pipeline_mode<synchronous>, transform_indices = @transform_7, window_bounds = array<i64: 32, 32>}, {pipeline_mode = #tpu.pipeline_mode<synchronous>, transform_indices = @transform_8, window_bounds = array<i64: 1, 32>}, {pipeline_mode = #tpu.pipeline_mode<synchronous>, transform_indices = @transform_9, window_bounds = array<i64: 32, 32>}, {pipeline_mode = #tpu.pipeline_mode<synchronous>, transform_indices = @transform_10, window_bounds = array<i64: 1, 32>}, {transform_indices = @transform_11, window_bounds = array<i64: 16, 32>}]} {
    %c0 = arith.constant 0 : index
    %c0_0 = arith.constant 0 : index
    %0 = vector.load %arg1[%c0, %c0_0] : memref<16x32xf32, #tpu.memory_space<vmem>>, vector<16x32xf32>
    %c0_1 = arith.constant 0 : index
    %c0_2 = arith.constant 0 : index
    %1 = vector.load %arg2[%c0_1, %c0_2] : memref<16x32xf32, #tpu.memory_space<vmem>>, vector<16x32xf32>
    %c0_3 = arith.constant 0 : index
    %c0_4 = arith.constant 0 : index
    %2 = vector.load %arg3[%c0_3, %c0_4] : memref<16x32xf32, #tpu.memory_space<vmem>>, vector<16x32xf32>
    %c0_5 = arith.constant 0 : index
    %c0_6 = arith.constant 0 : index
    %3 = vector.load %arg4[%c0_5, %c0_6] : memref<32x32xf32, #tpu.memory_space<vmem>>, vector<32x32xf32>
    %cst = arith.constant dense<0.000000e+00> : vector<16x32xf32>
    %4 = tpu.matmul %0, %3, %cst {dimension_numbers = #tpu.dot_dimension_numbers<[1], [0], [0], [1], [0, 0, 1, 1], [], []>} : vector<16x32xf32>, vector<32x32xf32>, vector<16x32xf32> -> vector<16x32xf32>
    %c0_7 = arith.constant 0 : index
    %c0_8 = arith.constant 0 : index
    %5 = vector.load %arg5[%c0_7, %c0_8] : memref<1x32xf32, #tpu.memory_space<vmem>>, vector<1x32xf32>
    %6 = vector.broadcast %5 : vector<1x32xf32> to vector<16x32xf32>
    %7 = arith.addf %4, %6 : vector<16x32xf32>
    %c0_9 = arith.constant 0 : index
    %c0_10 = arith.constant 0 : index
    %8 = vector.load %arg6[%c0_9, %c0_10] : memref<32x32xf32, #tpu.memory_space<vmem>>, vector<32x32xf32>
    %cst_11 = arith.constant dense<0.000000e+00> : vector<16x32xf32>
    %9 = tpu.matmul %1, %8, %cst_11 {dimension_numbers = #tpu.dot_dimension_numbers<[1], [0], [0], [1], [0, 0, 1, 1], [], []>} : vector<16x32xf32>, vector<32x32xf32>, vector<16x32xf32> -> vector<16x32xf32>
    %c0_12 = arith.constant 0 : index
    %c0_13 = arith.constant 0 : index
    %10 = vector.load %arg7[%c0_12, %c0_13] : memref<1x32xf32, #tpu.memory_space<vmem>>, vector<1x32xf32>
    %11 = vector.broadcast %10 : vector<1x32xf32> to vector<16x32xf32>
    %12 = arith.addf %9, %11 : vector<16x32xf32>
    %c0_14 = arith.constant 0 : index
    %c0_15 = arith.constant 0 : index
    %13 = vector.load %arg8[%c0_14, %c0_15] : memref<32x32xf32, #tpu.memory_space<vmem>>, vector<32x32xf32>
    %cst_16 = arith.constant dense<0.000000e+00> : vector<16x32xf32>
    %14 = tpu.matmul %2, %13, %cst_16 {dimension_numbers = #tpu.dot_dimension_numbers<[1], [0], [0], [1], [0, 0, 1, 1], [], []>} : vector<16x32xf32>, vector<32x32xf32>, vector<16x32xf32> -> vector<16x32xf32>
    %c0_17 = arith.constant 0 : index
    %c0_18 = arith.constant 0 : index
    %15 = vector.load %arg9[%c0_17, %c0_18] : memref<1x32xf32, #tpu.memory_space<vmem>>, vector<1x32xf32>
    %16 = vector.broadcast %15 : vector<1x32xf32> to vector<16x32xf32>
    %17 = arith.addf %14, %16 : vector<16x32xf32>
    %18 = vector.extract_strided_slice %7 {offsets = [0, 0], sizes = [8, 32], strides = [1, 1]} : vector<16x32xf32> to vector<8x32xf32>
    %19 = vector.extract_strided_slice %18 {offsets = [0, 0], sizes = [8, 16], strides = [1, 1]} : vector<8x32xf32> to vector<8x16xf32>
    %20 = vector.extract_strided_slice %18 {offsets = [0, 16], sizes = [8, 16], strides = [1, 1]} : vector<8x32xf32> to vector<8x16xf32>
    %21 = vector.extract_strided_slice %7 {offsets = [8, 0], sizes = [8, 32], strides = [1, 1]} : vector<16x32xf32> to vector<8x32xf32>
    %22 = vector.extract_strided_slice %21 {offsets = [0, 0], sizes = [8, 16], strides = [1, 1]} : vector<8x32xf32> to vector<8x16xf32>
    %23 = vector.extract_strided_slice %21 {offsets = [0, 16], sizes = [8, 16], strides = [1, 1]} : vector<8x32xf32> to vector<8x16xf32>
    %24 = vector.shape_cast %19 : vector<8x16xf32> to vector<1x8x16xf32>
    %25 = vector.shape_cast %20 : vector<8x16xf32> to vector<1x8x16xf32>
    %26 = vector.shape_cast %22 : vector<8x16xf32> to vector<1x8x16xf32>
    %27 = vector.shape_cast %23 : vector<8x16xf32> to vector<1x8x16xf32>
    %28 = tpu.concatenate %24, %25, %26, %27 in 0 : vector<1x8x16xf32>, vector<1x8x16xf32>, vector<1x8x16xf32>, vector<1x8x16xf32> -> vector<4x8x16xf32>
    %29 = vector.extract_strided_slice %12 {offsets = [0, 0], sizes = [8, 32], strides = [1, 1]} : vector<16x32xf32> to vector<8x32xf32>
    %30 = vector.extract_strided_slice %29 {offsets = [0, 0], sizes = [8, 16], strides = [1, 1]} : vector<8x32xf32> to vector<8x16xf32>
    %31 = vector.extract_strided_slice %29 {offsets = [0, 16], sizes = [8, 16], strides = [1, 1]} : vector<8x32xf32> to vector<8x16xf32>
    %32 = vector.extract_strided_slice %12 {offsets = [8, 0], sizes = [8, 32], strides = [1, 1]} : vector<16x32xf32> to vector<8x32xf32>
    %33 = vector.extract_strided_slice %32 {offsets = [0, 0], sizes = [8, 16], strides = [1, 1]} : vector<8x32xf32> to vector<8x16xf32>
    %34 = vector.extract_strided_slice %32 {offsets = [0, 16], sizes = [8, 16], strides = [1, 1]} : vector<8x32xf32> to vector<8x16xf32>
    %35 = vector.shape_cast %30 : vector<8x16xf32> to vector<1x8x16xf32>
    %36 = vector.shape_cast %31 : vector<8x16xf32> to vector<1x8x16xf32>
    %37 = vector.shape_cast %33 : vector<8x16xf32> to vector<1x8x16xf32>
    %38 = vector.shape_cast %34 : vector<8x16xf32> to vector<1x8x16xf32>
    %39 = tpu.concatenate %35, %36, %37, %38 in 0 : vector<1x8x16xf32>, vector<1x8x16xf32>, vector<1x8x16xf32>, vector<1x8x16xf32> -> vector<4x8x16xf32>
    %40 = vector.extract_strided_slice %17 {offsets = [0, 0], sizes = [8, 32], strides = [1, 1]} : vector<16x32xf32> to vector<8x32xf32>
    %41 = vector.extract_strided_slice %40 {offsets = [0, 0], sizes = [8, 16], strides = [1, 1]} : vector<8x32xf32> to vector<8x16xf32>
    %42 = vector.extract_strided_slice %40 {offsets = [0, 16], sizes = [8, 16], strides = [1, 1]} : vector<8x32xf32> to vector<8x16xf32>
    %43 = vector.extract_strided_slice %17 {offsets = [8, 0], sizes = [8, 32], strides = [1, 1]} : vector<16x32xf32> to vector<8x32xf32>
    %44 = vector.extract_strided_slice %43 {offsets = [0, 0], sizes = [8, 16], strides = [1, 1]} : vector<8x32xf32> to vector<8x16xf32>
    %45 = vector.extract_strided_slice %43 {offsets = [0, 16], sizes = [8, 16], strides = [1, 1]} : vector<8x32xf32> to vector<8x16xf32>
    %46 = vector.shape_cast %41 : vector<8x16xf32> to vector<1x8x16xf32>
    %47 = vector.shape_cast %42 : vector<8x16xf32> to vector<1x8x16xf32>
    %48 = vector.shape_cast %44 : vector<8x16xf32> to vector<1x8x16xf32>
    %49 = vector.shape_cast %45 : vector<8x16xf32> to vector<1x8x16xf32>
    %50 = tpu.concatenate %46, %47, %48, %49 in 0 : vector<1x8x16xf32>, vector<1x8x16xf32>, vector<1x8x16xf32>, vector<1x8x16xf32> -> vector<4x8x16xf32>
    "tpu.trace_start"() <{level = 10 : i32, message = "gqd,gkd->gqk"}> : () -> ()
    %cst_19 = arith.constant dense<0.000000e+00> : vector<4x8x8xf32>
    %51 = tpu.matmul %28, %39, %cst_19 {dimension_numbers = #tpu.dot_dimension_numbers<[2], [2], [1], [1], [0, 0, 0, 1, 1, 1], [0], [0]>} : vector<4x8x16xf32>, vector<4x8x16xf32>, vector<4x8x8xf32> -> vector<4x8x8xf32>
    "tpu.trace_stop"() : () -> ()
    %cst_20 = arith.constant dense<0xFF800000> : vector<4x8xf32>
    %52 = vector.multi_reduction <maximumf>, %51, %cst_20 [2] : vector<4x8x8xf32> to vector<4x8xf32>
    %53 = vector.shape_cast %52 : vector<4x8xf32> to vector<4x8x1xf32>
    %54 = vector.broadcast %53 : vector<4x8x1xf32> to vector<4x8x8xf32>
    %55 = arith.subf %51, %54 : vector<4x8x8xf32>
    %56 = math.exp %55 : vector<4x8x8xf32>
    %cst_21 = arith.constant dense<0.000000e+00> : vector<4x8xf32>
    %57 = vector.multi_reduction <add>, %56, %cst_21 [2] : vector<4x8x8xf32> to vector<4x8xf32>
    %58 = vector.shape_cast %57 : vector<4x8xf32> to vector<4x8x1xf32>
    %59 = tpu.reciprocal %58 {approx = true} : vector<4x8x1xf32> -> vector<4x8x1xf32>
    %60 = vector.broadcast %59 : vector<4x8x1xf32> to vector<4x8x8xf32>
    %61 = arith.mulf %56, %60 : vector<4x8x8xf32>
    "tpu.trace_start"() <{level = 10 : i32, message = "gqk,gkd->gqd"}> : () -> ()
    %cst_22 = arith.constant dense<0.000000e+00> : vector<4x8x16xf32>
    %62 = tpu.matmul %61, %50, %cst_22 {dimension_numbers = #tpu.dot_dimension_numbers<[2], [1], [1], [2], [0, 0, 0, 1, 1, 2], [0], [0]>} : vector<4x8x8xf32>, vector<4x8x16xf32>, vector<4x8x16xf32> -> vector<4x8x16xf32>
    "tpu.trace_stop"() : () -> ()
    %63 = vector.extract_strided_slice %62 {offsets = [0, 0, 0], sizes = [1, 8, 16], strides = [1, 1, 1]} : vector<4x8x16xf32> to vector<1x8x16xf32>
    %64 = vector.shape_cast %63 : vector<1x8x16xf32> to vector<8x16xf32>
    %65 = vector.extract_strided_slice %62 {offsets = [1, 0, 0], sizes = [1, 8, 16], strides = [1, 1, 1]} : vector<4x8x16xf32> to vector<1x8x16xf32>
    %66 = vector.shape_cast %65 : vector<1x8x16xf32> to vector<8x16xf32>
    %67 = tpu.concatenate %64, %66 in 1 : vector<8x16xf32>, vector<8x16xf32> -> vector<8x32xf32>
    %68 = vector.extract_strided_slice %62 {offsets = [2, 0, 0], sizes = [1, 8, 16], strides = [1, 1, 1]} : vector<4x8x16xf32> to vector<1x8x16xf32>
    %69 = vector.shape_cast %68 : vector<1x8x16xf32> to vector<8x16xf32>
    %70 = vector.extract_strided_slice %62 {offsets = [3, 0, 0], sizes = [1, 8, 16], strides = [1, 1, 1]} : vector<4x8x16xf32> to vector<1x8x16xf32>
    %71 = vector.shape_cast %70 : vector<1x8x16xf32> to vector<8x16xf32>
    %72 = tpu.concatenate %69, %71 in 1 : vector<8x16xf32>, vector<8x16xf32> -> vector<8x32xf32>
    %73 = tpu.concatenate %67, %72 in 0 : vector<8x32xf32>, vector<8x32xf32> -> vector<16x32xf32>
    %c0_23 = arith.constant 0 : index
    %c0_24 = arith.constant 0 : index
    %74 = vector.load %arg10[%c0_23, %c0_24] : memref<32x32xf32, #tpu.memory_space<vmem>>, vector<32x32xf32>
    %cst_25 = arith.constant dense<0.000000e+00> : vector<16x32xf32>
    %75 = tpu.matmul %73, %74, %cst_25 {dimension_numbers = #tpu.dot_dimension_numbers<[1], [0], [0], [1], [0, 0, 1, 1], [], []>} : vector<16x32xf32>, vector<32x32xf32>, vector<16x32xf32> -> vector<16x32xf32>
    %c0_26 = arith.constant 0 : index
    %c0_27 = arith.constant 0 : index
    %76 = vector.load %arg11[%c0_26, %c0_27] : memref<1x32xf32, #tpu.memory_space<vmem>>, vector<1x32xf32>
    %77 = vector.broadcast %76 : vector<1x32xf32> to vector<16x32xf32>
    %78 = arith.addf %75, %77 : vector<16x32xf32>
    %c0_28 = arith.constant 0 : index
    %c0_29 = arith.constant 0 : index
    %79 = vector.load %arg12[%c0_28, %c0_29] : memref<16x32xf32, #tpu.memory_space<vmem>>, vector<16x32xf32>
    tpu.vector_store %arg12[%c0_28, %c0_29], %78 {strides = array<i32>} : memref<16x32xf32, #tpu.memory_space<vmem>>, vector<16x32xf32>,
    return
  }
  func.func @transform_0(%arg0: i32) -> (i32, i32) {
    %c0_i32 = arith.constant 0 : i32
    %c0_i32_0 = arith.constant 0 : i32
    return %arg0, %c0_i32 : i32, i32
  }
  func.func @transform_1(%arg0: i32) -> (i32, i32) {
    %c0_i32 = arith.constant 0 : i32
    %c0_i32_0 = arith.constant 0 : i32
    return %arg0, %c0_i32 : i32, i32
  }
  func.func @transform_2(%arg0: i32) -> (i32, i32) {
    %c0_i32 = arith.constant 0 : i32
    %c0_i32_0 = arith.constant 0 : i32
    return %arg0, %c0_i32 : i32, i32
  }
  func.func @transform_3(%arg0: i32) -> (i32, i32) {
    %c0_i32 = arith.constant 0 : i32
    %c0_i32_0 = arith.constant 0 : i32
    %c0_i32_1 = arith.constant 0 : i32
    return %c0_i32, %c0_i32_0 : i32, i32
  }
  func.func @transform_4(%arg0: i32) -> (i32, i32) {
    %c0_i32 = arith.constant 0 : i32
    %c0_i32_0 = arith.constant 0 : i32
    %c0_i32_1 = arith.constant 0 : i32
    return %c0_i32, %c0_i32_0 : i32, i32
  }
  func.func @transform_5(%arg0: i32) -> (i32, i32) {
    %c0_i32 = arith.constant 0 : i32
    %c0_i32_0 = arith.constant 0 : i32
    %c0_i32_1 = arith.constant 0 : i32
    return %c0_i32, %c0_i32_0 : i32, i32
  }
  func.func @transform_6(%arg0: i32) -> (i32, i32) {
    %c0_i32 = arith.constant 0 : i32
    %c0_i32_0 = arith.constant 0 : i32
    %c0_i32_1 = arith.constant 0 : i32
    return %c0_i32, %c0_i32_0 : i32, i32
  }
  func.func @transform_7(%arg0: i32) -> (i32, i32) {
    %c0_i32 = arith.constant 0 : i32
    %c0_i32_0 = arith.constant 0 : i32
    %c0_i32_1 = arith.constant 0 : i32
    return %c0_i32, %c0_i32_0 : i32, i32
  }
  func.func @transform_8(%arg0: i32) -> (i32, i32) {
    %c0_i32 = arith.constant 0 : i32
    %c0_i32_0 = arith.constant 0 : i32
    %c0_i32_1 = arith.constant 0 : i32
    return %c0_i32, %c0_i32_0 : i32, i32
  }
  func.func @transform_9(%arg0: i32) -> (i32, i32) {
    %c0_i32 = arith.constant 0 : i32
    %c0_i32_0 = arith.constant 0 : i32
    %c0_i32_1 = arith.constant 0 : i32
    return %c0_i32, %c0_i32_0 : i32, i32
  }
  func.func @transform_10(%arg0: i32) -> (i32, i32) {
    %c0_i32 = arith.constant 0 : i32
    %c0_i32_0 = arith.constant 0 : i32
    %c0_i32_1 = arith.constant 0 : i32
    return %c0_i32, %c0_i32_0 : i32, i32
  }
  func.func @transform_11(%arg0: i32) -> (i32, i32) {
    %c0_i32 = arith.constant 0 : i32
    %c0_i32_0 = arith.constant 0 : i32
    return %arg0, %c0_i32 : i32, i32
  }
}

</mosaic_0001>

<bundles_post_ra>
// kernel: tpu_custom_call.1
= control target key start
LH: loop header
LB: loop body
LE: loop exit
PB: predicated region body
PF: predicated region fallthrough
CT: control target
= control target key end

     0   :  { %16 = vsyncpa [#allocation3], 0  ;;  %s1884_s0 = inlined_call_operand.hbm [shape: f32[16,32], index: 0, kind: input, shape index: {}]   ;;  %s1885_s1 = inlined_call_operand.hbm [shape: f32[16,32], index: 1, kind: input, shape index: {}]   ;;  %s1886_s2 = inlined_call_operand.hbm [shape: f32[16,32], index: 2, kind: input, shape index: {}]   ;;  %s1887_s3 = inlined_call_operand.hbm [shape: f32[32,32], index: 3, kind: input, shape index: {}]   ;;  %s1888_s4 = inlined_call_operand.vmem [shape: f32[1,32], index: 4, kind: input, shape index: {}]   ;;  %s1889_s5 = inlined_call_operand.hbm [shape: f32[32,32], index: 5, kind: input, shape index: {}]   ;;  %s1890_s6 = inlined_call_operand.vmem [shape: f32[1,32], index: 6, kind: input, shape index: {}]   ;;  %s1891_s7 = inlined_call_operand.hbm [shape: f32[32,32], index: 7, kind: input, shape index: {}]   ;;  %s1892_s8 = inlined_call_operand.hbm [shape: f32[1,32], index: 8, kind: input, shape index: {}]   ;;  %s1893_s9 = inlined_call_operand.vmem [shape: f32[32,32], index: 9, kind: input, shape index: {}]   ;;  %s1894_s10 = inlined_call_operand.vmem [shape: f32[1,32], index: 10, kind: input, shape index: {}]   ;;  %s1895_s11 = inlined_call_operand.hbm [shape: f32[16,32], index: 11, kind: output, shape index: {}]  }
   0x1   :  { %17 = vsyncpa [#allocation6], 0 }
   0x2   :  { %18 = vsyncpa [#allocation9], 0 }
   0x3   :  { %19 = vsyncpa [#allocation12], 0 }
   0x4   :  { %20 = vsyncpa [#allocation4], 0  ;;  %s1589_s17 = smov [#allocation5]   ;;  %s1590_s19 = smov [#allocation8]  }
   0x5   :  { %s38_s18 = sshll.u32 %s1589_s17, 4  ;;  %s62_s20 = sshll.u32 %s1590_s19, 4  ;;  %s39_s18 = int_to_ptr.vmem [resolvable:$true] %s38_s18  ;;  %s1663_s20 = int_to_ptr.vmem [resolvable:$true] %s62_s20 }
   0x6   :  { %s1403_s23 = scalar_lea.hbm %s1885_s1, 256 }
   0x7   :  { %p1404_p0 = scmp.ne.s32.totalorder %s1885_s1, %s1403_s23  ;;  %p1407_p1 = scmp.lt.u32.totalorder %s1403_s23, %s1885_s1 }
   0x9   :  { %p1409_p2 = pnand %p1407_p1, %p1404_p0 }
   0xb   :  { %1412 = shalt.err (!%p1409_p2)
}
   0xc   :  { %s1413_s28 = scalar_lea.vmem %s39_s18, 256  ;;  %p1418_p4 = scmp.lt.s32.totalorder %s39_s18, %s39_s18 }
   0xd   :  { %p1414_p3 = scmp.ne.s32.totalorder %s39_s18, %s1413_s28  ;;  %p1419_p5 = scmp.lt.s32.totalorder %s1413_s28, %s1413_s28 }
   0xf   :  { %p1420_p6 = por %p1419_p5, %p1418_p4 }
  0x11   :  { %p1421_p7 = pnand %p1420_p6, %p1414_p3 }
  0x13   :  { %1424 = shalt.err (!%p1421_p7)
}
  0x14   :  { %s1591_s29 = smov 128   ;;  %s1592_s30 = smov 8  }
  0x15   :  { %44 = dma.hbm_to_vmem [thread:$0]  %s1885_s1, 256, %s39_s18, [#allocation6], %s1591_s29, %s1591_s29, %s1592_s30  }
  0x16   :  { %s1425_s16 = scalar_lea.hbm %s1887_s3, 512 }
  0x17   :  { %p1426_p8 = scmp.ne.s32.totalorder %s1887_s3, %s1425_s16  ;;  %p1429_p9 = scmp.lt.u32.totalorder %s1425_s16, %s1887_s3 }
  0x19   :  { %p1431_p10 = pnand %p1429_p9, %p1426_p8 }
  0x1b   :  { %1434 = shalt.err (!%p1431_p10)
}
  0x1c   :  { %s1435_s23 = scalar_lea.vmem %s1663_s20, 512  ;;  %p1440_p12 = scmp.lt.s32.totalorder %s1663_s20, %s1663_s20 }
  0x1d   :  { %p1436_p11 = scmp.ne.s32.totalorder %s1663_s20, %s1435_s23  ;;  %p1441_p13 = scmp.lt.s32.totalorder %s1435_s23, %s1435_s23 }
  0x1f   :  { %p1442_p0 = por %p1441_p13, %p1440_p12 }
  0x21   :  { %p1443_p1 = pnand %p1442_p0, %p1436_p11 }
  0x23   :  { %1446 = shalt.err (!%p1443_p1)
}
  0x24   :  { %68 = dma.hbm_to_vmem [thread:$0]  %s1887_s3, 512, %s1663_s20, [#allocation9], %s1591_s29, %s1591_s29, %s1592_s30  }
  0x25   :  { %s1593_s24 = smov [#allocation11]   ;;  %s1594_s26 = smov [#allocation2]  }
  0x26   :  { %s90_s25 = sshll.u32 %s1593_s24, 4  ;;  %s26_s27 = sshll.u32 %s1594_s26, 4  ;;  %s91_s25 = int_to_ptr.vmem [resolvable:$true] %s90_s25  ;;  %s1700_s27 = int_to_ptr.vmem [resolvable:$true] %s26_s27 }
  0x27   :  { %s1447_s13 = scalar_lea.hbm %s1891_s7, 512 }
  0x28   :  { %p1448_p2 = scmp.ne.s32.totalorder %s1891_s7, %s1447_s13  ;;  %p1451_p3 = scmp.lt.u32.totalorder %s1447_s13, %s1891_s7 }
  0x2a   :  { %p1453_p4 = pnand %p1451_p3, %p1448_p2 }
  0x2c   :  { %1456 = shalt.err (!%p1453_p4)
}
  0x2d   :  { %s1457_s3 = scalar_lea.vmem %s91_s25, 512  ;;  %p1462_p6 = scmp.lt.s32.totalorder %s91_s25, %s91_s25 }
  0x2e   :  { %p1458_p5 = scmp.ne.s32.totalorder %s91_s25, %s1457_s3  ;;  %p1463_p7 = scmp.lt.s32.totalorder %s1457_s3, %s1457_s3 }
  0x30   :  { %p1464_p8 = por %p1463_p7, %p1462_p6 }
  0x32   :  { %p1465_p9 = pnand %p1464_p8, %p1458_p5 }
  0x34   :  { %1468 = shalt.err (!%p1465_p9)
}
  0x35   :  { %96 = dma.hbm_to_vmem [thread:$0]  %s1891_s7, 512, %s91_s25, [#allocation12], %s1591_s29, %s1591_s29, %s1592_s30  }
  0x36   :  { %s1469_s23 = scalar_lea.hbm %s1884_s0, 256 }
  0x37   :  { %p1470_p10 = scmp.ne.s32.totalorder %s1884_s0, %s1469_s23  ;;  %p1473_p11 = scmp.lt.u32.totalorder %s1469_s23, %s1884_s0 }
  0x39   :  { %p1475_p12 = pnand %p1473_p11, %p1470_p10 }
  0x3b   :  { %1478 = shalt.err (!%p1475_p12)
}
  0x3c   :  { %s1479_s28 = scalar_lea.vmem %s1700_s27, 256  ;;  %p1484_p0 = scmp.lt.s32.totalorder %s1700_s27, %s1700_s27 }
  0x3d   :  { %p1480_p13 = scmp.ne.s32.totalorder %s1700_s27, %s1479_s28  ;;  %p1485_p1 = scmp.lt.s32.totalorder %s1479_s28, %s1479_s28 }
  0x3f   :  { %p1486_p2 = por %p1485_p1, %p1484_p0 }
  0x41   :  { %p1487_p3 = pnand %p1486_p2, %p1480_p13 }
  0x43   :  { %1490 = shalt.err (!%p1487_p3)
}
  0x44   :  { %32 = dma.hbm_to_vmem [thread:$0]  %s1884_s0, 256, %s1700_s27, [#allocation3], %s1591_s29, %s1591_s29, %s1592_s30  }
  0x45   :  { %s1595_s12 = smov [#allocation7]   ;;  %s1596_s14 = smov [#allocation10]  }
  0x46   :  { %s50_s13 = sshll.u32 %s1595_s12, 4  ;;  %s76_s15 = sshll.u32 %s1596_s14, 4  ;;  %s51_s13 = int_to_ptr.vmem [resolvable:$true] %s50_s13  ;;  %s1737_s15 = int_to_ptr.vmem [resolvable:$true] %s76_s15 }
  0x47   :  { %s1491_s3 = scalar_lea.hbm %s1886_s2, 256 }
  0x48   :  { %p1492_p4 = scmp.ne.s32.totalorder %s1886_s2, %s1491_s3  ;;  %p1495_p5 = scmp.lt.u32.totalorder %s1491_s3, %s1886_s2 }
  0x4a   :  { %p1497_p6 = pnand %p1495_p5, %p1492_p4 }
  0x4c   :  { %1500 = shalt.err (!%p1497_p6)
}
  0x4d   :  { %s1501_s0 = scalar_lea.vmem %s51_s13, 256  ;;  %p1506_p8 = scmp.lt.s32.totalorder %s51_s13, %s51_s13 }
  0x4e   :  { %p1502_p7 = scmp.ne.s32.totalorder %s51_s13, %s1501_s0  ;;  %p1507_p9 = scmp.lt.s32.totalorder %s1501_s0, %s1501_s0 }
  0x50   :  { %p1508_p10 = por %p1507_p9, %p1506_p8 }
  0x52   :  { %p1509_p11 = pnand %p1508_p10, %p1502_p7 }
  0x54   :  { %1512 = shalt.err (!%p1509_p11)
}
  0x55   :  { %56 = dma.hbm_to_vmem [thread:$0]  %s1886_s2, 256, %s51_s13, [#allocation6], %s1591_s29, %s1591_s29, %s1592_s30  }
  0x56   :  { %s1513_s24 = scalar_lea.hbm %s1889_s5, 512 }
  0x57   :  { %p1514_p12 = scmp.ne.s32.totalorder %s1889_s5, %s1513_s24  ;;  %p1517_p13 = scmp.lt.u32.totalorder %s1513_s24, %s1889_s5 }
  0x59   :  { %p1519_p0 = pnand %p1517_p13, %p1514_p12 }
  0x5b   :  { %1522 = shalt.err (!%p1519_p0)
}
  0x5c   :  { %s1523_s12 = scalar_lea.vmem %s1737_s15, 512  ;;  %p1528_p2 = scmp.lt.s32.totalorder %s1737_s15, %s1737_s15 }
  0x5d   :  { %p1524_p1 = scmp.ne.s32.totalorder %s1737_s15, %s1523_s12  ;;  %p1529_p3 = scmp.lt.s32.totalorder %s1523_s12, %s1523_s12 }
  0x5f   :  { %p1530_p4 = por %p1529_p3, %p1528_p2 }
  0x61   :  { %p1531_p5 = pnand %p1530_p4, %p1524_p1 }
  0x63   :  { %1534 = shalt.err (!%p1531_p5)
}
  0x64   :  { %82 = dma.hbm_to_vmem [thread:$0]  %s1889_s5, 512, %s1737_s15, [#allocation9], %s1591_s29, %s1591_s29, %s1592_s30  }
  0x65   :  { %s1597_s14 = smov [#allocation13]   ;;  %s1535_s20 = scalar_lea.hbm %s1892_s8, 16 }
  0x66   :  { %s103_s16 = sshll.u32 %s1597_s14, 4  ;;  %p1536_p6 = scmp.ne.s32.totalorder %s1892_s8, %s1535_s20  ;;  %s104_s16 = int_to_ptr.vmem [resolvable:$true] %s103_s16 }
  0x67   :  { %p1539_p7 = scmp.lt.u32.totalorder %s1535_s20, %s1892_s8 }
  0x69   :  { %p1541_p8 = pnand %p1539_p7, %p1536_p6 }
  0x6b   :  { %1544 = shalt.err (!%p1541_p8)
}
  0x6c   :  { %s1545_s27 = scalar_lea.vmem %s104_s16, 16  ;;  %s1549_s5 = scalar_lea.vmem %s104_s16, 32 }
  0x6d   :  { %p1546_p9 = scmp.ne.s32.totalorder %s104_s16, %s1545_s27  ;;  %p1550_p10 = scmp.lt.s32.totalorder %s104_s16, %s104_s16 }
  0x6e   :  { %p1551_p11 = scmp.lt.s32.totalorder %s1549_s5, %s1545_s27 }
  0x70   :  { %p1552_p12 = por %p1551_p11, %p1550_p10 }
  0x72   :  { %p1553_p13 = pnand %p1552_p12, %p1546_p9 }
  0x74   :  { %1556 = shalt.err (!%p1553_p13)
}
  0x75   :  { %106 = dma.hbm_to_vmem [thread:$0]  %s1892_s8, 16, %s104_s16, [#allocation12]  }
  0x76   :  { %1579 = dma.done.wait [#allocation3], 256  }
  0x77   :  { %1580 = vsyncadd [#allocation3], 4294967040 }
  0x78   :  { %1581 = dma.done.wait [#allocation6], 512  }
  0x79   :  { %1582 = vsyncadd [#allocation6], 4294966784 }
  0x7a   :  { %1583 = dma.done.wait [#allocation9], 1024  }
  0x7b   :  { %1584 = vsyncadd [#allocation9], 4294966272 }
  0x7c   :  { %1585 = dma.done.wait [#allocation12], 528  }
  0x7d   :  { %1586 = vsyncadd [#allocation12], 4294966768  ;;  %v231_v0 = vld [vmem:[#allocation10] sm:$0xff]  ;;  %v232_v1 = vld [vmem:[#allocation10 + $0x8] sm:$0xff]  ;;  %vm149_vm0 = vcmask 261120   ;;  %v1598_v16 = vmov 0.0  }
  0x7e   :  { %v138_v2 = vld [vmem:[#allocation8] sm:$0xff]  ;;  %v1349_v3 = vpack.c.bf16 %v232_v1, %v231_v0  ;;  %v139_v4 = vld [vmem:[#allocation8 + $0x8] sm:$0xff]  ;;  %v233_v5 = vld [vmem:[#allocation10 + $0x10] sm:$0xff]  ;;  %vm1599_vm1 = vmmov 0   ;;  %vm435_vm2 = vcmask 130048   ;;  %s1600_s26 = smov 112  }
  0x7f   :  { %v234_v6 = vld [vmem:[#allocation10 + $0x18] sm:$0xff]  ;;  %v1341_v7 = vpack.c.bf16 %v139_v4, %v138_v2  ;;  %v140_v9 = vld [vmem:[#allocation8 + $0x10] sm:$0xff]  ;;  %v134_v11 = vld [vmem:[#allocation5] sm:$0xff]  ;;  %vm732_vm3 = vcmask 64512   ;;  %s1601_s14 = smov 16   ;;  %s1602_s17 = smov [#allocation14]  }
  0x80   :  { %v1353_v8 = vpack.c.bf16 %v234_v6, %v233_v5  ;;  %v141_v10 = vld [vmem:[#allocation8 + $0x18] sm:$0xff]  ;;  %1350 = vmatprep.subr.bf16.mxu1 %v1349_v3  ;;  %1276 = vmatprep.mubr.msk.f32.mxu1 %vm149_vm0, %v134_v11  ;;  %v132_v13 = vld [vmem:[#allocation2] sm:$0xff]  ;;  %v135_v14 = vld [vmem:[#allocation5 + $0x8] sm:$0xff]  ;;  %s1178_s3 = sshll.u32 %s1602_s17, 4  ;;  %s1179_s3 = int_to_ptr.vmem [resolvable:$true] %s1178_s3 }
  0x81   :  { %v1345_v12 = vpack.c.bf16 %v141_v10, %v140_v9  ;;  %1352 = vmatpush3.bf16.msra.mxu1 %v1349_v3  ;;  %1342 = vmatprep.subr.bf16.mxu0 %v1341_v7  ;;  %v133_v15 = vld [vmem:[#allocation2 + $0x8] sm:$0xff]  ;;  %v1196_v17 = vld [vmem:[%s1890_s6] ss:$0 sm:$0xff]  ;;  %v323_v27 = vld [vmem:[#allocation11] sm:$0xff]  ;;  %s1557_s20 = scalar_lea.vmem %s1179_s3, 256  ;;  %p1562_p1 = scmp.lt.s32.totalorder %s1179_s3, %s1179_s3 }
  0x82   :  { %1344 = vmatpush3.bf16.msra.mxu0 %v1341_v7  ;;  %1354 = vmatprep.subr.bf16.mxu1 %v1353_v8  ;;  %v1193_v19 = vld [vmem:[%s1888_s4] ss:$0 sm:$0xff]  ;;  %v324_v28 = vld [vmem:[#allocation11 + $0x8] sm:$0xff]  ;;  %v326_v31 = vld [vmem:[#allocation11 + $0x18] sm:$0xff]  ;;  %p1558_p0 = scmp.ne.s32.totalorder %s1179_s3, %s1557_s20  ;;  %p1563_p2 = scmp.lt.s32.totalorder %s1557_s20, %s1557_s20 }
  0x83   :  { %1346 = vmatprep.subr.bf16.mxu0 %v1345_v12  ;;  %1265 = vmatprep.mubr.msk.f32.mxu0 %vm149_vm0, %v132_v13  ;;  %v325_v29 = vld [vmem:[#allocation11 + $0x10] sm:$0xff]  ;;  %v1357_v30 = vpack.c.bf16 %v324_v28, %v323_v27  ;;  %v137_v34 = vld [vmem:[#allocation7 + $0x8] sm:$0xff]  ;;  %v1199_v52 = vld [vmem:[#allocation13] ss:$0 sm:$0xff] }
  0x84   :  { %v136_v32 = vld [vmem:[#allocation7] sm:$0xff]  ;;  %v1361_v33 = vpack.c.bf16 %v326_v31, %v325_v29  ;;  %v1080_v28 = vld [vmem:[%s1893_s9 + $0x8] sm:$0xff]  ;;  %p1564_p3 = por %p1563_p2, %p1562_p1 }
  0x85   :  { %1356 = vmatpush3.bf16.msra.mxu1 %v1353_v8  ;;  %v1079_v27 = vld [vmem:[%s1893_s9] sm:$0xff] }
  0x86   :  { %1348 = vmatpush3.bf16.msra.mxu0 %v1345_v12  ;;  %1290 = vmatprep.subr.mxu1 %v1598_v16  ;;  %v1365_v29 = vpack.c.bf16 %v1080_v28, %v1079_v27  ;;  %p1565_p4 = pnand %p1564_p3, %p1558_p0 }
  0x87   :  { %1358 = vmatprep.subr.bf16.mxu0 %v1357_v30 }
  0x88   :  { %1277 = vmatmul.mubr.msk.f32.vlgmr.msra.gmra.mrb[0].mxu1 %vm149_vm0, %v135_v14 }
  0x89   :  { %1266 = vmatmul.mubr.msk.f32.vlgmr.msra.gmra.mrb[0].mxu0 %vm149_vm0, %v133_v15  ;;  %1292 = vmatprep.mubr.msk.f32.mxu1 %vm1599_vm1, %v1598_v16 }
  0x8a   :  { %1287 = vmatprep.mubr.msk.f32.mxu0 %vm149_vm0, %v136_v32  ;;  %1360 = vmatpush3.bf16.msra.mxu0 %v1357_v30  ;;  %v1081_v30 = vld [vmem:[%s1893_s9 + $0x10] sm:$0xff] }
  0x8b   :  { %1362 = vmatprep.subr.bf16.mxu0 %v1361_v33 }
  0x8e   :  { %1364 = vmatpush3.bf16.msra.mxu0 %v1361_v33 }
  0x8f   :  { %1310 = vmatprep.subr.mxu0 %v1598_v16 }
  0x91   :  { %1288 = vmatmul.mubr.msk.f32.vlgmr.msra.gmra.mrb[2].mxu0 %vm149_vm0, %v137_v34 }
  0x92   :  { %1312 = vmatprep.mubr.msk.f32.mxu0 %vm1599_vm1, %v1598_v16 }
 0x15b   :  { %v1278_v18 = vpop.f32.mrb[0].mxu1 }
 0x15c   :  { %v320_v20 = vadd.f32 %v1278_v18, %v1196_v17  ;;  %v314_v21 = vpop.f32.mrb[1].mxu1  ;;  %v1267_v22 = vpop.f32.mrb[0].mxu0 }
 0x15d   :  { %v315_v23 = vadd.f32 %v1196_v17, %v314_v21  ;;  %v222_v24 = vpop.f32.mrb[1].mxu0  ;;  %v228_v25 = vadd.f32 %v1267_v22, %v1193_v19 }
 0x15e   :  { %425 = vrot.lane.b32.xlu1 %v320_v20, %s1600_s26  ;;  %v223_v26 = vadd.f32 %v1193_v19, %v222_v24 }
 0x15f   :  { %422 = vrot.lane.b32.xlu0 %v315_v23, %s1600_s26  ;;  %1291 = vmatpush3.xpose.msk.msra.mxu1 %vm435_vm2, %v315_v23 }
 0x160   :  { %1295 = vmatprep.subr.mxu1 %v1598_v16 }
 0x162   :  { %419 = vrot.lane.b32.xlu1 %v228_v25, %s1600_s26  ;;  %1293 = vmatmul.mubr.msk.f32.vlgmr.msra.gmra.mrb[2].mxu1 %vm435_vm2, %v223_v26 }
 0x163   :  { %416 = vrot.lane.b32.xlu0 %v223_v26, %s1600_s26  ;;  %1297 = vmatprep.mubr.msk.f32.mxu1 %vm1599_vm1, %v1598_v16 }
 0x164   :  { %v1289_v51 = vpop.f32.mrb[2].mxu0 }
 0x165   :  { %v412_v53 = vadd.f32 %v1289_v51, %v1199_v52  ;;  %v406_v54 = vpop.f32.mrb[3].mxu0 }
 0x166   :  { %v407_v55 = vadd.f32 %v1199_v52, %v406_v54 }
 0x168   :  { %1311 = vmatpush3.msra.mxu0 %v407_v55 }
 0x169   :  { %1320 = vmatprep.subr.mxu0 %v1598_v16 }
 0x1d0   :  { %v426_v37 = vpop.permute.xlu1 %425 }
 0x1d1   :  { %v423_v35 = vpop.permute.xlu0 %422 }
 0x1d2   :  { %1296 = vmatpush3.xpose.msk.msra.mxu1 %vm435_vm2, %v423_v35 }
 0x1d3   :  { %1300 = vmatprep.subr.mxu1 %v1598_v16 }
 0x1d4   :  { %v420_v38 = vpop.permute.xlu1 %419 }
 0x1d5   :  { %v417_v36 = vpop.permute.xlu0 %416 }
 0x1d6   :  { %1298 = vmatmul.mubr.msk.f32.vlgmr.msra.gmra.mrb[4].mxu1 %vm435_vm2, %v417_v36 }
 0x1d7   :  { %1301 = vmatpush3.xpose.msk.msra.mxu1 %vm435_vm2, %v320_v20  ;;  %1302 = vmatprep.mubr.msk.f32.mxu1 %vm1599_vm1, %v1598_v16 }
 0x1d8   :  { %1305 = vmatprep.subr.mxu1 %v1598_v16 }
 0x1da   :  { %1303 = vmatmul.mubr.msk.f32.vlgmr.msra.gmra.mrb[6].mxu1 %vm435_vm2, %v228_v25 }
 0x1db   :  { %1306 = vmatpush3.xpose.msk.msra.mxu1 %vm435_vm2, %v426_v37  ;;  %1307 = vmatprep.mubr.msk.f32.mxu1 %vm1599_vm1, %v1598_v16 }
 0x1dc   :  { %1315 = vmatprep.subr.mxu1 %v1598_v16 }
 0x1de   :  { %1308 = vmatmul.mubr.msk.f32.vlgmr.msra.gmra.mrb[8].mxu1 %vm435_vm2, %v420_v38 }
 0x1df   :  { %1317 = vmatprep.mubr.msk.f32.mxu1 %vm1599_vm1, %v1598_v16 }
 0x235   :  { %v506_v39 = vpop.f32.mrb[2].mxu1 }
 0x236   :  { %v1294_v40 = vpop.f32.mrb[3].mxu1  ;;  %v733_v46 = vsel %vm732_vm3, %v506_v39, -inf }
 0x2a9   :  { %v580_v41 = vpop.f32.mrb[4].mxu1 }
 0x2aa   :  { %v1299_v42 = vpop.f32.mrb[5].mxu1  ;;  %v736_v43 = vsel %vm732_vm3, %v580_v41, -inf }
 0x2ab   :  { %737 = vmax.xlane.f32.xlu0 %v736_v43 }
 0x2ad   :  { %v654_v44 = vpop.f32.mrb[6].mxu1 }
 0x2ae   :  { %v1304_v45 = vpop.f32.mrb[7].mxu1  ;;  %v739_v49 = vsel %vm732_vm3, %v654_v44, -inf }
 0x2af   :  { %734 = vmax.xlane.f32.xlu0 %v733_v46 }
 0x2b1   :  { %v728_v47 = vpop.f32.mrb[8].mxu1 }
 0x2b2   :  { %v1309_v48 = vpop.f32.mrb[9].mxu1  ;;  %v742_v50 = vsel %vm732_vm3, %v728_v47, -inf }
 0x2b3   :  { %740 = vmax.xlane.f32.xlu0 %v739_v49  ;;  %743 = vmax.xlane.f32.xlu1 %v742_v50 }
 0x338   :  { %v738_v56 = vpop.xlane.xlu0 %737 }
 0x339   :  { %v746_v57 = vsub.f32 %v580_v41, %v738_v56 }
 0x33b   :  { %v751_v58 = vmul.f32 1.442695, %v746_v57 }
 0x33c   :  { %v735_v2 = vpop.xlane.xlu0 %734 }
 0x33d   :  { %1387 = vpow2.f32 %v751_v58  ;;  %v745_v3 = vsub.f32 %v506_v39, %v735_v2 }
 0x33f   :  { %v749_v4 = vmul.f32 1.442695, %v745_v3 }
 0x340   :  { %v744_v59 = vpop.xlane.xlu1 %743  ;;  %v741_v5 = vpop.xlane.xlu0 %740 }
 0x341   :  { %v748_v60 = vsub.f32 %v728_v47, %v744_v59  ;;  %v747_v6 = vsub.f32 %v654_v44, %v741_v5  ;;  %v1214_v44 = vld [vmem:[%s1894_s10] ss:$0 sm:$0xff] }
 0x343   :  { %v755_v61 = vmul.f32 1.442695, %v748_v60  ;;  %v753_v7 = vmul.f32 1.442695, %v747_v6 }
 0x345   :  { %1389 = vpow2.f32 %v755_v61 }
 0x346   :  { %1391 = vpow2.f32 %v749_v4 }
 0x347   :  { %v1388_v62 = vpop.eup %1387  ;;  %1393 = vpow2.f32 %v753_v7 }
 0x348   :  { %v760_v63 = vsel %vm732_vm3, %v1388_v62, 0.0 }
 0x349   :  { %761 = vadd.xlane.f32.xlu1 %v760_v63 }
 0x34f   :  { %v1390_v0 = vpop.eup %1389 }
 0x350   :  { %v766_v1 = vsel %vm732_vm3, %v1390_v0, 0.0  ;;  %v1392_v8 = vpop.eup %1391 }
 0x351   :  { %767 = vadd.xlane.f32.xlu0 %v766_v1  ;;  %v757_v9 = vsel %vm732_vm3, %v1392_v8, 0.0  ;;  %v1394_v10 = vpop.eup %1393 }
 0x352   :  { %v763_v11 = vsel %vm732_vm3, %v1394_v10, 0.0 }
 0x35a   :  { %428 = vrot.lane.b32.xlu1 %v407_v55, %s1600_s26 }
 0x367   :  { %432 = vrot.lane.b32.xlu0 %v412_v53, %s1600_s26 }
 0x37e   :  { %758 = vadd.xlane.f32.xlu1 %v757_v9 }
 0x386   :  { %764 = vadd.xlane.f32.xlu0 %v763_v11 }
 0x3d6   :  { %v762_v12 = vpop.xlane.xlu1 %761 }
 0x3d7   :  { %1395 = vrcp.f32 %v762_v12 }
 0x3da   :  { %v429_v13 = vpop.permute.xlu1 %428 }
 0x3db   :  { %1316 = vmatpush3.msra.mxu1 %v429_v13 }
 0x3dc   :  { %1325 = vmatprep.subr.mxu1 %v1598_v16 }
 0x3de   :  { %v768_v14 = vpop.xlane.xlu0 %767 }
 0x3df   :  { %1397 = vrcp.f32 %v768_v14 }
 0x3e1   :  { %v1396_v15 = vpop.eup %1395 }
 0x3e2   :  { %v774_v17 = vmul.f32 %v1396_v15, %v1388_v62  ;;  %v433_v18 = vpop.permute.xlu0 %432 }
 0x3e4   :  { %1318 = vmatmul.mubr.msk.f32.vlgmr.msra.gmra.mrb[10].mxu1 %vm732_vm3, %v774_v17 }
 0x3e5   :  { %1326 = vmatpush3.msra.mxu1 %v433_v18  ;;  %1327 = vmatprep.mubr.msk.f32.mxu1 %vm1599_vm1, %v1598_v16 }
 0x3e9   :  { %v1398_v19 = vpop.eup %1397 }
 0x3ea   :  { %v776_v20 = vmul.f32 %v1398_v19, %v1390_v0 }
 0x3ec   :  { %1328 = vmatmul.mubr.msk.f32.vlgmr.msra.gmra.mrb[12].mxu1 %vm732_vm3, %v776_v20 }
 0x40b   :  { %v759_v21 = vpop.xlane.xlu1 %758 }
 0x40c   :  { %1399 = vrcp.f32 %v759_v21 }
 0x413   :  { %v765_v22 = vpop.xlane.xlu0 %764 }
 0x414   :  { %1401 = vrcp.f32 %v765_v22 }
 0x416   :  { %v1400_v23 = vpop.eup %1399 }
 0x417   :  { %v773_v24 = vmul.f32 %v1400_v23, %v1392_v8 }
 0x419   :  { %1313 = vmatmul.mubr.msk.f32.vlgmr.msra.gmra.mrb[4].mxu0 %vm732_vm3, %v773_v24 }
 0x41a   :  { %1321 = vmatpush3.msra.mxu0 %v412_v53  ;;  %1322 = vmatprep.mubr.msk.f32.mxu0 %vm1599_vm1, %v1598_v16  ;;  %v1082_v16 = vld [vmem:[%s1893_s9 + $0x18] sm:$0xff] }
 0x41b   :  { %1366 = vmatprep.subr.bf16.mxu0 %v1365_v29  ;;  %v1369_v31 = vpack.c.bf16 %v1082_v16, %v1081_v30 }
 0x41e   :  { %v1402_v25 = vpop.eup %1401 }
 0x41f   :  { %v775_v26 = vmul.f32 %v1402_v25, %v1394_v10 }
 0x421   :  { %1323 = vmatmul.mubr.msk.f32.vlgmr.msra.gmra.mrb[6].mxu0 %vm732_vm3, %v775_v26 }
 0x422   :  { %1368 = vmatpush3.bf16.msra.mxu0 %v1365_v29 }
 0x423   :  { %1370 = vmatprep.subr.bf16.mxu0 %v1369_v31 }
 0x426   :  { %1372 = vmatpush3.bf16.msra.mxu0 %v1369_v31 }
 0x4b7   :  { %v919_v32 = vpop.f32.mrb[10].mxu1 }
 0x4b8   :  { %1070 = vrot.lane.b32.xlu1 %v919_v32, %s1601_s14  ;;  %v1319_v33 = vpop.f32.mrb[11].mxu1 }
 0x4bf   :  { %v1065_v34 = vpop.f32.mrb[12].mxu1 }
 0x4c0   :  { %1075 = vrot.lane.b32.xlu0 %v1065_v34, %s1601_s14  ;;  %v1329_v35 = vpop.f32.mrb[13].mxu1 }
 0x4ec   :  { %v846_v36 = vpop.f32.mrb[4].mxu0 }
 0x4ed   :  { %v1314_v37 = vpop.f32.mrb[5].mxu0 }
 0x4f4   :  { %v992_v38 = vpop.f32.mrb[6].mxu0 }
 0x4f5   :  { %v1324_v39 = vpop.f32.mrb[7].mxu0 }
 0x52a   :  { %v1071_v40 = vpop.permute.xlu1 %1070 }
 0x52b   :  { %v1073_v41 = vsel %vm435_vm2, %v846_v36, %v1071_v40 }
 0x52c   :  { %1338 = vmatprep.mubr.msk.f32.mxu0 %vm149_vm0, %v1073_v41 }
 0x532   :  { %v1076_v42 = vpop.permute.xlu0 %1075 }
 0x533   :  { %v1078_v43 = vsel %vm435_vm2, %v992_v38, %v1076_v42 }
 0x534   :  { %1339 = vmatmul.mubr.msk.f32.vlgmr.msra.gmra.mrb[8].mxu0 %vm149_vm0, %v1078_v43 }
 0x607   :  { %v1340_v45 = vpop.f32.mrb[8].mxu0 }
 0x608   :  { %v1168_v46 = vadd.f32 %v1340_v45, %v1214_v44  ;;  %v1162_v47 = vpop.f32.mrb[9].mxu0 }
 0x609   :  { %v1163_v48 = vadd.f32 %v1214_v44, %v1162_v47 }
 0x60a   :  { %1172 = vst.msk [vmem:[#allocation14 + $0x8] sm:$0xff] %vm149_vm0, %v1168_v46 }
 0x60b   :  { %1171 = vst.msk [vmem:[#allocation14] sm:$0xff] %vm149_vm0, %v1163_v48 }
 0x60c   :  { %1568 = shalt.err (!%p1565_p4)
}
 0x60d   :  { %s1569_s21 = scalar_lea.hbm %s1895_s11, 256 }
 0x60e   :  { %p1570_p5 = scmp.ne.s32.totalorder %s1895_s11, %s1569_s21  ;;  %p1573_p6 = scmp.lt.u32.totalorder %s1569_s21, %s1895_s11 }
 0x610   :  { %p1575_p7 = pnand %p1573_p6, %p1570_p5 }
 0x612   :  { %1578 = shalt.err (!%p1575_p7)
}
 0x613   :  { %1184 = dma.vmem_to_hbm [thread:$0]  %s1179_s3, 256, %s1895_s11, [#allocation4], %s1591_s29, %s1591_s29, %s1592_s30  }
 0x614   :  { %1587 = dma.done.wait [#allocation4], 256  }
 0x615   :  { %1588 = vsyncadd [#allocation4], 4294967040 }
 0x616   :  { %1188 = vsyncpa [#allocation3], 1 }
 0x617   :  { %1189 = vsyncpa [#allocation6], 1 }
 0x618   :  { %1190 = vsyncpa [#allocation9], 1 }
 0x619   :  { %1191 = vsyncpa [#allocation12], 1 }
 0x61a   :  { %1192 = vsyncpa [#allocation4], 1 }

</bundles_post_ra>
